<compile_context>
chip_gen: v7x
topology: tpu7x:2x2x1
jax: 0.10.0
libtpu: 0.0.40
codegen_flags: <defaults>
</compile_context>

<pallas_src>
import functools

import jax
import jax.numpy as jnp
from jax.experimental import pallas as pl
from jax.experimental.pallas import tpu as pltpu


# Target size (bytes) for one INPUT tile; multi-MiB tiles reach ~85%+ of the
# HBM roofline while staying far below any generation's VMEM capacity.
_INPUT_TILE_TARGET = 4 << 20


def _cdiv(a, b):
    return (a + b - 1) // b


def _round_up(x, m):
    return ((x + m - 1) // m) * m


def _sublane_pack(dtype):
    """Rows per packed sublane group for this dtype (f32->8, bf16->16, int8->32)."""
    itemsize = jnp.dtype(dtype).itemsize
    return 8 * max(1, 4 // itemsize)


def _vmem_capacity_bytes():
    """Physical VMEM capacity; conservative fallback if the query fails."""
    try:
        return int(pltpu.get_tpu_info().vmem_capacity_bytes)
    except Exception:
        return 64 << 20  # safe lower bound (v7x per-TC)


def _bytes_per_tile_row(dim, itemsize):
    # 2x double-buffered (in + out) tiles in x.dtype  -> 4 * dim * itemsize
    # ~2 full-tile f32 intermediates inside the body  -> 2 * dim * 4
    return 4 * dim * itemsize + 2 * dim * 4


def _pick_row_tile(rows, dim, dtype, vmem_budget_bytes):
    """Bytes-targeted, VMEM-bounded, sublane-packed row tile."""
    pack = _sublane_pack(dtype)
    itemsize = jnp.dtype(dtype).itemsize

    # Hard bound from the VMEM budget (double-buffered tiles + f32 temps).
    max_rows = max(pack, (vmem_budget_bytes // _bytes_per_tile_row(dim, itemsize))
                   // pack * pack)

    # Bytes-based target for the input tile (~4 MiB), rounded to the pack.
    target_rows = max(pack, (_INPUT_TILE_TARGET // (dim * itemsize)) // pack * pack)

    tile = min(target_rows, max_rows)
    # Don't make the tile (much) larger than the whole problem.
    tile = min(tile, _round_up(rows, pack))
    tile = max(tile, pack)

    # Prefer an even number of grid steps so v7x's two TensorCores split the
    # "parallel" axis evenly; harmless on single-TC v5e/v6e.
    steps = _cdiv(rows, tile)
    if steps > 1 and steps % 2 == 1:
        tile = max(pack, _round_up(_cdiv(rows, steps + 1), pack))
    return tile


def _rmsnorm_kernel(x_ref, w_ref, o_ref, *, eps, approx):
    # x_ref: (row_tile, dim) tile; w_ref: (1, dim) resident in VMEM; o_ref: like x_ref.
    xf = x_ref[...].astype(jnp.float32)
    # mean(x^2) over the lane axis, then sqrt == norm * dim**-0.5
    ms = jnp.mean(xf * xf, axis=-1, keepdims=True)
    # eps is added to the RMS value (NOT under the sqrt), exactly as in PyTorch.
    inv = pl.reciprocal(jnp.sqrt(ms) + eps, approx=approx)
    w = w_ref[...].astype(jnp.float32)
    # Re-read x for the output scale so the f32 temp above need not stay live
    # across the cross-lane reduce (less vreg/VMEM-scratch pressure).
    o_ref[...] = (x_ref[...].astype(jnp.float32) * (inv * w)).astype(o_ref.dtype)


def rmsnorm(x, weight, eps=1e-8, *, row_tile=None, approx=False):
    """x: (..., dim), weight: (dim,). Returns same shape/dtype as x.

    approx=False (default) uses the exact reciprocal and bit-matches the
    PyTorch module; approx=True uses the EUP fast reciprocal (~1e-2 rel err).
    """
    orig_shape = x.shape
    dim = orig_shape[-1]
    x2d = x.reshape(-1, dim)
    rows = x2d.shape[0]

    vmem_cap = _vmem_capacity_bytes()
    # ~60% of physical VMEM for the streamed tiles + temps:
    # ~76 MiB on 128 MiB parts (v5e/v6e), ~38 MiB on v7x (64 MiB).
    vmem_budget = (vmem_cap * 3) // 5

    if row_tile is None:
        row_tile = _pick_row_tile(rows, dim, x.dtype, vmem_budget)

    itemsize = jnp.dtype(x.dtype).itemsize
    resident = (_bytes_per_tile_row(dim, itemsize) * row_tile
                + dim * jnp.dtype(weight.dtype).itemsize)
    # Scoped-VMEM limit: enough for the resident tiles + headroom, never
    # exceeding (physical capacity - 8 MiB) on any generation.
    vmem_limit = int(min(vmem_cap - (8 << 20),
                         max(resident + (4 << 20), 32 << 20)))

    w2d = weight.reshape(1, dim)
    grid = (_cdiv(rows, row_tile),)  # ragged trailing block handled by Pallas masking

    kernel = functools.partial(_rmsnorm_kernel, eps=eps, approx=approx)
    out = pl.pallas_call(
        kernel,
        out_shape=jax.ShapeDtypeStruct((rows, dim), x.dtype),
        grid_spec=pltpu.PrefetchScalarGridSpec(
            num_scalar_prefetch=0,
            grid=grid,
            in_specs=[
                pl.BlockSpec((row_tile, dim), lambda i: (i, 0)),
                # Weight: tiny, reused every step -> fully resident in VMEM.
                pl.BlockSpec(memory_space=pltpu.MemorySpace.VMEM),
            ],
            out_specs=pl.BlockSpec((row_tile, dim), lambda i: (i, 0)),
        ),
        compiler_params=pltpu.CompilerParams(
            dimension_semantics=("parallel",),
            vmem_limit_bytes=vmem_limit,
        ),
    )(x2d, w2d)

    return out.reshape(orig_shape)


def rmsnorm_ref(x, weight, eps=1e-8):
    # Pure-JAX reference mirroring the PyTorch forward exactly.
    xf = x.astype(jnp.float32)
    norm = jnp.linalg.norm(xf, axis=-1, keepdims=True) * (x.shape[-1] ** -0.5)
    return (weight.astype(jnp.float32) * xf / (norm + eps)).astype(x.dtype)


if __name__ == "__main__":
    key = jax.random.PRNGKey(0)
    batch, seq, hidden = 2, 8, 128
    kx, kw = jax.random.split(key)
    x = jax.random.normal(kx, (batch, seq, hidden), dtype=jnp.float32)
    # nn.Parameter(torch.ones(dim)), perturbed so the weight multiply is exercised.
    weight = jnp.ones((hidden,), dtype=jnp.float32) + 0.01 * jnp.arange(
        hidden, dtype=jnp.float32
    )

    ref = rmsnorm_ref(x, weight, eps=1e-8)

    # 1) Default (exact-reciprocal) path: bit-for-bit semantics of the module.
    out_exact = jax.block_until_ready(rmsnorm(x, weight, eps=1e-8))
    assert out_exact.shape == x.shape and out_exact.dtype == x.dtype
    assert jnp.allclose(out_exact, ref, atol=1e-5, rtol=1e-5), "exact path mismatch"

    # 2) Fast path (EUP approx reciprocal): same eps placement, tiny
    #    approximation error -> checked at a looser tolerance.
    out_fast = jax.block_until_ready(rmsnorm(x, weight, eps=1e-8, approx=True))
    assert jnp.allclose(out_fast, ref, atol=2e-2, rtol=2e-2), "approx path mismatch"

    # 3) Ragged row count, single partial block (no wrapper pad/slice).
    xr = jax.random.normal(kw, (3, 5, hidden), dtype=jnp.float32)
    out_r = jax.block_until_ready(rmsnorm(xr, weight, eps=1e-8))
    assert out_r.shape == xr.shape
    assert jnp.allclose(out_r, rmsnorm_ref(xr, weight), atol=1e-5, rtol=1e-5), \
        "ragged-rows mismatch"

    # 4) Ragged rows across a multi-step grid (forces a masked trailing block).
    xm = jax.random.normal(kw, (20, hidden), dtype=jnp.float32)
    out_m = jax.block_until_ready(rmsnorm(xm, weight, eps=1e-8, row_tile=8))
    assert jnp.allclose(out_m, rmsnorm_ref(xm, weight), atol=1e-5, rtol=1e-5), \
        "multi-step ragged mismatch"

    # 5) bf16 input (exercises dtype-aware sublane packing: 16-row tiles).
    xb = x.astype(jnp.bfloat16)
    out_b = jax.block_until_ready(rmsnorm(xb, weight, eps=1e-8))
    assert out_b.dtype == jnp.bfloat16
    assert jnp.allclose(
        out_b.astype(jnp.float32),
        rmsnorm_ref(xb, weight).astype(jnp.float32),
        atol=2e-2, rtol=2e-2,
    ), "bf16 mismatch"

    print("KERNEL_OK")
</pallas_src>

<mosaic_0001>
module attributes {stable_mosaic.version = 11 : i64} {
  func.func @_rmsnorm_kernel(%arg0: i32, %arg1: memref<16x128xf32, #tpu.memory_space<vmem>>, %arg2: memref<1x128xf32, #tpu.memory_space<vmem>>, %arg3: memref<16x128xf32, #tpu.memory_space<vmem>>) attributes {dimension_semantics = [#tpu.dimension_semantics<parallel>], iteration_bounds = array<i64: 1>, scalar_prefetch = 0 : i64, scratch_operands = 0 : i64, tpu.core_type = #tpu.core_type<tc>, window_params = [{transform_indices = @transform_0, window_bounds = array<i64: 16, 128>}, {pipeline_mode = #tpu.pipeline_mode<synchronous>, transform_indices = @transform_1, window_bounds = array<i64: 1, 128>}, {transform_indices = @transform_2, window_bounds = array<i64: 16, 128>}]} {
    %c0 = arith.constant 0 : index
    %c0_0 = arith.constant 0 : index
    %0 = vector.load %arg1[%c0, %c0_0] : memref<16x128xf32, #tpu.memory_space<vmem>>, vector<16x128xf32>
    %1 = arith.mulf %0, %0 : vector<16x128xf32>
    %cst = arith.constant dense<0.000000e+00> : vector<16xf32>
    %2 = vector.multi_reduction <add>, %1, %cst [1] : vector<16x128xf32> to vector<16xf32>
    %3 = vector.shape_cast %2 : vector<16xf32> to vector<16x1xf32>
    %cst_1 = arith.constant 1.280000e+02 : f32
    %4 = vector.broadcast %cst_1 : f32 to vector<16x1xf32>
    %5 = arith.divf %3, %4 : vector<16x1xf32>
    %6 = math.sqrt %5 : vector<16x1xf32>
    %cst_2 = arith.constant 9.99999993E-9 : f32
    %7 = vector.broadcast %cst_2 : f32 to vector<16x1xf32>
    %8 = arith.addf %6, %7 : vector<16x1xf32>
    %9 = tpu.reciprocal %8 : vector<16x1xf32> -> vector<16x1xf32>
    %c0_3 = arith.constant 0 : index
    %c0_4 = arith.constant 0 : index
    %10 = vector.load %arg2[%c0_3, %c0_4] : memref<1x128xf32, #tpu.memory_space<vmem>>, vector<1x128xf32>
    %c0_5 = arith.constant 0 : index
    %c0_6 = arith.constant 0 : index
    %11 = vector.load %arg1[%c0_5, %c0_6] : memref<16x128xf32, #tpu.memory_space<vmem>>, vector<16x128xf32>
    %12 = vector.broadcast %9 : vector<16x1xf32> to vector<16x128xf32>
    %13 = vector.broadcast %10 : vector<1x128xf32> to vector<16x128xf32>
    %14 = arith.mulf %12, %13 : vector<16x128xf32>
    %15 = arith.mulf %11, %14 : vector<16x128xf32>
    %c0_7 = arith.constant 0 : index
    %c0_8 = arith.constant 0 : index
    %16 = vector.load %arg3[%c0_7, %c0_8] : memref<16x128xf32, #tpu.memory_space<vmem>>, vector<16x128xf32>
    tpu.vector_store %arg3[%c0_7, %c0_8], %15 {strides = array<i32>} : memref<16x128xf32, #tpu.memory_space<vmem>>, vector<16x128xf32>,
    return
  }
  func.func @transform_0(%arg0: i32) -> (i32, i32) {
    %c0_i32 = arith.constant 0 : i32
    %c0_i32_0 = arith.constant 0 : i32
    return %arg0, %c0_i32 : i32, i32
  }
  func.func @transform_1(%arg0: i32) -> (i32, i32) {
    %c0_i32 = arith.constant 0 : i32
    %c0_i32_0 = arith.constant 0 : i32
    %c0_i32_1 = arith.constant 0 : i32
    return %c0_i32, %c0_i32_0 : i32, i32
  }
  func.func @transform_2(%arg0: i32) -> (i32, i32) {
    %c0_i32 = arith.constant 0 : i32
    %c0_i32_0 = arith.constant 0 : i32
    return %arg0, %c0_i32 : i32, i32
  }
}

</mosaic_0001>

<bundles_post_ra>
// kernel: tpu_custom_call.1
= control target key start
LH: loop header
LB: loop body
LE: loop exit
PB: predicated region body
PF: predicated region fallthrough
CT: control target
= control target key end

     0   :  { %7 = vsyncpa [#allocation3], 0  ;;  %s198_s0 = inlined_call_operand.hbm [shape: f32[16,128], index: 0, kind: input, shape index: {}]   ;;  %s199_s1 = inlined_call_operand.vmem [shape: f32[1,128], index: 1, kind: input, shape index: {}]   ;;  %s200_s2 = inlined_call_operand.hbm [shape: f32[16,128], index: 2, kind: output, shape index: {}]  }
   0x1   :  { %8 = vsyncpa [#allocation4], 0  ;;  %s146_s9 = smov [#allocation2]   ;;  %s98_s13 = scalar_lea.hbm %s198_s0, 256 }
   0x2   :  { %s14_s10 = sshll.u32 %s146_s9, 4  ;;  %p99_p0 = scmp.ne.s32.totalorder %s198_s0, %s98_s13  ;;  %s15_s10 = int_to_ptr.vmem [resolvable:$true] %s14_s10 }
   0x3   :  { %p102_p1 = scmp.lt.u32.totalorder %s98_s13, %s198_s0 }
   0x5   :  { %p104_p2 = pnand %p102_p1, %p99_p0 }
   0x7   :  { %107 = shalt.err (!%p104_p2)
}
   0x8   :  { %s108_s18 = scalar_lea.vmem %s15_s10, 256  ;;  %p113_p4 = scmp.lt.s32.totalorder %s15_s10, %s15_s10 }
   0x9   :  { %p109_p3 = scmp.ne.s32.totalorder %s15_s10, %s108_s18  ;;  %p114_p5 = scmp.lt.s32.totalorder %s108_s18, %s108_s18 }
   0xb   :  { %p115_p6 = por %p114_p5, %p113_p4 }
   0xd   :  { %p116_p7 = pnand %p115_p6, %p109_p3 }
   0xf   :  { %119 = shalt.err (!%p116_p7)
}
  0x10   :  { %s147_s19 = smov 128   ;;  %s148_s20 = smov 8  }
  0x11   :  { %20 = dma.hbm_to_vmem [thread:$0]  %s198_s0, 256, %s15_s10, [#allocation3], %s147_s19, %s147_s19, %s148_s20  }
  0x12   :  { %142 = dma.done.wait [#allocation3], 256  }
  0x13   :  { %143 = vsyncadd [#allocation3], 4294967040  ;;  %v26_v0 = vld [vmem:[#allocation2] sm:$0xff]  ;;  %v27_v1 = vld [vmem:[#allocation2 + $0x8] sm:$0xff]  ;;  %s149_s24 = smov [#allocation5]  }
  0x14   :  { %v28_v2 = vmul.f32 %v26_v0, %v26_v0  ;;  %v29_v3 = vmul.f32 %v27_v1, %v27_v1  ;;  %v85_v20 = vld [vmem:[%s199_s1] ss:$0 sm:$0xff]  ;;  %s73_s25 = sshll.u32 %s149_s24, 4  ;;  %s74_s25 = int_to_ptr.vmem [resolvable:$true] %s73_s25 }
  0x15   :  { %s120_s26 = scalar_lea.vmem %s74_s25, 256  ;;  %p125_p9 = scmp.lt.s32.totalorder %s74_s25, %s74_s25 }
  0x16   :  { %30 = vadd.xlane.f32.xlu0 %v28_v2  ;;  %p121_p8 = scmp.ne.s32.totalorder %s74_s25, %s120_s26  ;;  %p126_p10 = scmp.lt.s32.totalorder %s120_s26, %s120_s26 }
  0x18   :  { %p127_p11 = por %p126_p10, %p125_p9 }
  0x1a   :  { %32 = vadd.xlane.f32.xlu0 %v29_v3  ;;  %p128_p12 = pnand %p127_p11, %p121_p8 }
  0xa3   :  { %v31_v4 = vpop.xlane.xlu0 %30 }
  0xa4   :  { %v35_v5 = vmul.f32 0.0078125, %v31_v4 }
  0xa6   :  { %90 = vrsqrt.f32 %v35_v5  ;;  %vm39_vm0 = vcmp.eq.f32.partialorder %v35_v5, inf  ;;  %v42_v10 = vand.u32 2147483648, %v35_v5  ;;  %vm41_vm1 = vcmp.eq.f32.partialorder %v35_v5, 0.0 }
  0xa7   :  { %v33_v6 = vpop.xlane.xlu0 %32 }
  0xa8   :  { %v36_v7 = vmul.f32 0.0078125, %v33_v6 }
  0xaa   :  { %92 = vrsqrt.f32 %v36_v7  ;;  %vm46_vm2 = vcmp.eq.f32.partialorder %v36_v7, inf  ;;  %v49_v16 = vand.u32 2147483648, %v36_v7  ;;  %vm48_vm3 = vcmp.eq.f32.partialorder %v36_v7, 0.0 }
  0xb0   :  { %v91_v8 = vpop.eup %90 }
  0xb1   :  { %v38_v9 = vmul.f32 %v91_v8, %v35_v5 }
  0xb3   :  { %v40_v11 = vsel %vm39_vm0, %v35_v5, %v38_v9 }
  0xb4   :  { %v93_v12 = vpop.eup %92  ;;  %v43_v13 = vsel %vm41_vm1, %v42_v10, %v40_v11 }
  0xb5   :  { %v45_v14 = vmul.f32 %v93_v12, %v36_v7  ;;  %v51_v15 = vadd.f32 1e-08, %v43_v13 }
  0xb7   :  { %v47_v17 = vsel %vm46_vm2, %v36_v7, %v45_v14  ;;  %94 = vrcp.f32 %v51_v15 }
  0xb8   :  { %v50_v18 = vsel %vm48_vm3, %v49_v16, %v47_v17 }
  0xb9   :  { %v52_v19 = vadd.f32 1e-08, %v50_v18 }
  0xbb   :  { %96 = vrcp.f32 %v52_v19 }
  0xc1   :  { %v95_v21 = vpop.eup %94 }
  0xc2   :  { %v62_v22 = vmul.f32 %v95_v21, %v85_v20 }
  0xc4   :  { %v64_v23 = vmul.f32 %v62_v22, %v26_v0 }
  0xc5   :  { %v97_v24 = vpop.eup %96 }
  0xc6   :  { %v63_v25 = vmul.f32 %v97_v24, %v85_v20  ;;  %66 = vst [vmem:[#allocation5] sm:$0xff] %v64_v23 }
  0xc8   :  { %v65_v26 = vmul.f32 %v63_v25, %v27_v1 }
  0xca   :  { %67 = vst [vmem:[#allocation5 + $0x8] sm:$0xff] %v65_v26 }
  0xcb   :  { %131 = shalt.err (!%p128_p12)
}
  0xcc   :  { %s132_s28 = scalar_lea.hbm %s200_s2, 256 }
  0xcd   :  { %p133_p13 = scmp.ne.s32.totalorder %s200_s2, %s132_s28  ;;  %p136_p0 = scmp.lt.u32.totalorder %s132_s28, %s200_s2 }
  0xcf   :  { %p138_p1 = pnand %p136_p0, %p133_p13 }
  0xd1   :  { %141 = shalt.err (!%p138_p1)
}
  0xd2   :  { %79 = dma.vmem_to_hbm [thread:$0]  %s74_s25, 256, %s200_s2, [#allocation4], %s147_s19, %s147_s19, %s148_s20  }
  0xd3   :  { %144 = dma.done.wait [#allocation4], 256  }
  0xd4   :  { %145 = vsyncadd [#allocation4], 4294967040 }
  0xd5   :  { %83 = vsyncpa [#allocation3], 1 }
  0xd6   :  { %84 = vsyncpa [#allocation4], 1 }

</bundles_post_ra>
